<compile_context>
chip_gen: v7x
topology: tpu7x:2x2x1
jax: 0.10.0
libtpu: 0.0.40
codegen_flags: <defaults>
</compile_context>

<pallas_src>
import functools

import jax
import jax.numpy as jnp
from jax.experimental import pallas as pl
from jax.experimental.pallas import tpu as pltpu


def fused_mlp_kernel(xt_ref, wt_ref, bt_ref, o_ref):
    # y^T = Wc^T @ x^T + bc^T
    #   xt_ref: (K=10, TB)   batch on lanes (lane-dense loads)
    #   wt_ref: (N=4,  K=10) resident fused weight
    #   bt_ref: (N=4,  1)    resident fused bias
    #   o_ref : (N=4,  TB)   lane-dense stores (TB multiple of 128)
    y = jnp.dot(wt_ref[...], xt_ref[...], preferred_element_type=jnp.float32)
    y = y + bt_ref[...]                       # f32 bias add (v5e-friendly)
    o_ref[...] = y.astype(o_ref.dtype)


@functools.partial(jax.jit, static_argnames=("tb", "mxu_dtype"))
def net_forward(x, w1, b1, w2, b2, *, tb=2048, mxu_dtype=None):
    """Forward pass of Net.  x: (B, 10) -> (B, 4)."""
    B, K = x.shape                 # K = 10
    N = w2.shape[1]                # N = 4
    out_dtype = x.dtype

    # --- (1) algebraic fusion of the two linear layers (exact, no nonlinearity)
    wc = jnp.dot(w1, w2, preferred_element_type=jnp.float32)        # (10, 4)
    bc = jnp.dot(b1, w2, preferred_element_type=jnp.float32) + b2   # (1, 4)

    # --- (2) pick a lane-aligned batch tile and pad the batch if needed
    tb = max(128, (int(tb) // 128) * 128)
    if B <= tb:
        tb = max(128, pl.cdiv(B, 128) * 128)   # single-tile case for small B
    b_pad = pl.cdiv(B, tb) * tb

    # --- (3) lane-dense layout: batch on the lane axis (wrapper-side plumbing,
    #         fused into the same XLA program by jit)
    if b_pad == B:
        x_t = x.T                                                    # (10, B)
    else:
        x_t = jnp.zeros((K, b_pad), x.dtype).at[:, :B].set(x.T)      # (10, B_pad)
    wc_t = wc.T.astype(jnp.float32)                                  # (4, 10)
    bc_t = bc.T.astype(jnp.float32)                                  # (4, 1)

    if mxu_dtype is not None:      # optional bf16 MXU operands (f32 accumulate)
        x_t = x_t.astype(mxu_dtype)
        wc_t = wc_t.astype(mxu_dtype)

    grid = (b_pad // tb,)
    bytes_per_elem = jnp.dtype(x_t.dtype).itemsize
    cost = pl.CostEstimate(
        flops=2 * b_pad * K * N,
        transcendentals=0,
        bytes_accessed=b_pad * K * bytes_per_elem
        + b_pad * N * jnp.dtype(out_dtype).itemsize
        + (N * K + N) * 4,
    )

    y_t = pl.pallas_call(
        fused_mlp_kernel,
        out_shape=jax.ShapeDtypeStruct((N, b_pad), out_dtype),
        grid_spec=pltpu.PrefetchScalarGridSpec(
            num_scalar_prefetch=0,
            grid=grid,
            in_specs=[
                pl.BlockSpec((K, tb), lambda i: (0, i)),   # x^T batch tile
                pl.BlockSpec((N, K), lambda i: (0, 0)),    # fused weight, resident
                pl.BlockSpec((N, 1), lambda i: (0, 0)),    # fused bias, resident
            ],
            out_specs=pl.BlockSpec((N, tb), lambda i: (0, i)),
        ),
        compiler_params=pltpu.CompilerParams(
            dimension_semantics=("parallel",)),            # 2 TCs on v7x
        cost_estimate=cost,
    )(x_t, wc_t, bc_t)

    return y_t[:, :B].T                                    # (B, 4)


def init_params(key):
    # Deterministic init mimicking nn.Linear's U(-1/sqrt(fan_in), 1/sqrt(fan_in)).
    k1, k2, k3, k4 = jax.random.split(key, 4)
    fan1, fan2 = 10, 20
    bound1 = 1.0 / jnp.sqrt(fan1)
    bound2 = 1.0 / jnp.sqrt(fan2)
    w1 = jax.random.uniform(k1, (10, 20), jnp.float32, -bound1, bound1)
    b1 = jax.random.uniform(k2, (1, 20), jnp.float32, -bound1, bound1)
    w2 = jax.random.uniform(k3, (20, 4), jnp.float32, -bound2, bound2)
    b2 = jax.random.uniform(k4, (1, 4), jnp.float32, -bound2, bound2)
    return w1, b1, w2, b2


if __name__ == "__main__":
    key = jax.random.PRNGKey(0)
    k_x, k_p, k_x2 = jax.random.split(key, 3)
    w1, b1, w2, b2 = init_params(k_p)

    def ref_fn(x):
        return (x @ w1 + b1) @ w2 + b2

    # Small batch (single grid step, padded to 128 lanes).
    B = 8
    x = jax.random.normal(k_x, (B, 10), jnp.float32)
    out = jax.block_until_ready(net_forward(x, w1, b1, w2, b2))
    assert out.shape == (B, 4)
    assert jnp.allclose(out, ref_fn(x), atol=1e-5, rtol=1e-5)

    # Non-multiple batch with a multi-step grid (exercises tiling + padding).
    B2 = 300
    x2 = jax.random.normal(k_x2, (B2, 10), jnp.float32)
    out2 = jax.block_until_ready(net_forward(x2, w1, b1, w2, b2, tb=128))
    assert out2.shape == (B2, 4)
    assert jnp.allclose(out2, ref_fn(x2), atol=1e-5, rtol=1e-5)

    print("KERNEL_OK")
</pallas_src>

<mosaic_0001>
module attributes {stable_mosaic.version = 11 : i64} {
  func.func @fused_mlp_kernel(%arg0: i32, %arg1: memref<10x128xf32, #tpu.memory_space<vmem>>, %arg2: memref<4x10xf32, #tpu.memory_space<vmem>>, %arg3: memref<4x1xf32, #tpu.memory_space<vmem>>, %arg4: memref<4x128xf32, #tpu.memory_space<vmem>>) attributes {dimension_semantics = [#tpu.dimension_semantics<parallel>], iteration_bounds = array<i64: 1>, scalar_prefetch = 0 : i64, scratch_operands = 0 : i64, tpu.core_type = #tpu.core_type<tc>, window_params = [{transform_indices = @transform_0, window_bounds = array<i64: 10, 128>}, {pipeline_mode = #tpu.pipeline_mode<synchronous>, transform_indices = @transform_1, window_bounds = array<i64: 4, 10>}, {pipeline_mode = #tpu.pipeline_mode<synchronous>, transform_indices = @transform_2, window_bounds = array<i64: 4, 1>}, {transform_indices = @transform_3, window_bounds = array<i64: 4, 128>}]} {
    %c0 = arith.constant 0 : index
    %c0_0 = arith.constant 0 : index
    %0 = vector.load %arg2[%c0, %c0_0] : memref<4x10xf32, #tpu.memory_space<vmem>>, vector<4x10xf32>
    %c0_1 = arith.constant 0 : index
    %c0_2 = arith.constant 0 : index
    %1 = vector.load %arg1[%c0_1, %c0_2] : memref<10x128xf32, #tpu.memory_space<vmem>>, vector<10x128xf32>
    %cst = arith.constant dense<0.000000e+00> : vector<4x128xf32>
    %2 = tpu.matmul %0, %1, %cst {dimension_numbers = #tpu.dot_dimension_numbers<[1], [0], [0], [1], [0, 0, 1, 1], [], []>} : vector<4x10xf32>, vector<10x128xf32>, vector<4x128xf32> -> vector<4x128xf32>
    %c0_3 = arith.constant 0 : index
    %c0_4 = arith.constant 0 : index
    %3 = vector.load %arg3[%c0_3, %c0_4] : memref<4x1xf32, #tpu.memory_space<vmem>>, vector<4x1xf32>
    %4 = vector.broadcast %3 : vector<4x1xf32> to vector<4x128xf32>
    %5 = arith.addf %2, %4 : vector<4x128xf32>
    %c0_5 = arith.constant 0 : index
    %c0_6 = arith.constant 0 : index
    %6 = vector.load %arg4[%c0_5, %c0_6] : memref<4x128xf32, #tpu.memory_space<vmem>>, vector<4x128xf32>
    tpu.vector_store %arg4[%c0_5, %c0_6], %5 {strides = array<i32>} : memref<4x128xf32, #tpu.memory_space<vmem>>, vector<4x128xf32>,
    return
  }
  func.func @transform_0(%arg0: i32) -> (i32, i32) {
    %c0_i32 = arith.constant 0 : i32
    %c0_i32_0 = arith.constant 0 : i32
    return %c0_i32, %arg0 : i32, i32
  }
  func.func @transform_1(%arg0: i32) -> (i32, i32) {
    %c0_i32 = arith.constant 0 : i32
    %c0_i32_0 = arith.constant 0 : i32
    %c0_i32_1 = arith.constant 0 : i32
    return %c0_i32, %c0_i32_0 : i32, i32
  }
  func.func @transform_2(%arg0: i32) -> (i32, i32) {
    %c0_i32 = arith.constant 0 : i32
    %c0_i32_0 = arith.constant 0 : i32
    %c0_i32_1 = arith.constant 0 : i32
    return %c0_i32, %c0_i32_0 : i32, i32
  }
  func.func @transform_3(%arg0: i32) -> (i32, i32) {
    %c0_i32 = arith.constant 0 : i32
    %c0_i32_0 = arith.constant 0 : i32
    return %c0_i32, %arg0 : i32, i32
  }
}

</mosaic_0001>

<bundles_post_ra>
// kernel: net_forward.1
= control target key start
LH: loop header
LB: loop body
LE: loop exit
PB: predicated region body
PF: predicated region fallthrough
CT: control target
= control target key end

     0   :  { %vm27_vm0 = vcmask 1041408   ;;  %v128_v0 = vmov 0.0|0.0   ;;  %vm129_vm1 = vmmov 1   ;;  %vm130_vm3 = vmmov 0   ;;  %s168_s0 = inlined_call_operand.vmem [shape: f32[10,128], index: 0, kind: input, shape index: {}]   ;;  %s169_s2 = inlined_call_operand.vmem [shape: f32[4,1], index: 2, kind: input, shape index: {}]   ;;  %s170_s1 = inlined_call_operand.vmem [shape: f32[4,10], index: 1, kind: input, shape index: {}]   ;;  %s171_s3 = inlined_call_operand.vmem [shape: f32[4,128], index: 3, kind: output, shape index: {}]  }
   0x1   :  { %118 = vmatprep.subr.bf16.mxu0 %v128_v0  ;;  %v15_v1 = vld [vmem:[%s168_s0] sm:$0xff]  ;;  %v16_v2 = vld [vmem:[%s168_s0 + $0x8] sm:$0x3]  ;;  %vm120_vm2 = vmpackc.low %vm27_vm0, %vm129_vm1  ;;  %v131_v4 = vmov 0.0   ;;  %v132_v5 = vmov 0   ;;  %vm23_vm4 = vcmask 80896  }
   0x2   :  { %v119_v3 = vpack.c.bf16 %v16_v2, %v15_v1  ;;  %115 = vmatprep.mubr.msk.f32.mxu0 %vm130_vm3, %v131_v4  ;;  %127 = vset.pattern.permute.xlu0 %v132_v5  ;;  %v17_v6 = vld [vmem:[%s169_s2] sm:$0xf] }
   0x3   :  { %20 = vperm.xlu0 %127, %v17_v6   ;;  %v14_v7 = vld [vmem:[%s170_s1] sm:$0xf] }
   0x4   :  { %121 = vmatpush3.bf16.msk.msra.mxu0 %vm120_vm2, %v119_v3 }
   0x7   :  { %116 = vmatmul.mubr.msk.f32.vlgmr.msra.gmra.mrb[0].mxu0 %vm23_vm4, %v14_v7 }
  0x82   :  { %v21_v8 = vpop.permute.xlu0 %20 }
  0xda   :  { %v97_v9 = vpop.f32.mrb[0].mxu0 }
  0xdb   :  { %v98_v10 = vadd.f32 %v97_v9, %v21_v8  ;;  %v117_v11 = vpop.f32.mrb[1].mxu0 }
  0xdd   :  { %101 = vst [vmem:[%s171_s3] sm:$0xf] %v98_v10 }

</bundles_post_ra>
